<compile_context>
chip_gen: v6e
topology: v6e:2x2x1
jax: 0.10.0
libtpu: 0.0.40
codegen_flags: <defaults>
</compile_context>

<pallas_src>
import functools

import numpy as np
import jax
import jax.numpy as jnp
from jax import lax
from jax.experimental import pallas as pl
from jax.experimental.pallas import tpu as pltpu


def _make_pool_matrix(H, W, k, s):
    """[H*W, Ho*Wo] matrix M with M[i, o] = 1/k^2 iff input pixel i lies in window o."""
    Ho = (H - k) // s + 1
    Wo = (W - k) // s + 1
    m = np.zeros((H * W, Ho * Wo), np.float32)
    inv = 1.0 / (k * k)
    for oh in range(Ho):
        for ow in range(Wo):
            o = oh * Wo + ow
            for kh in range(k):
                for kw in range(k):
                    m[(oh * s + kh) * W + (ow * s + kw), o] = inv
    return m


def _spiking_avgpool_kernel(x_ref, w_ref, out_ref, v_ref, *, n_t, decay, v_th):
    # x_ref  : [Tc, TP, HW]   Tc timesteps; sublane dim = N*C tile, lane dim = H*W
    # w_ref  : [HW, HWo]      pooling matrix (already scaled by 1/k^2), grid-resident
    # out_ref: [Tc, TP, HWo]  spikes
    # v_ref  : [TP, HWo]      membrane potential, persists across time blocks
    @pl.when(pl.program_id(1) == 0)
    def _():
        v_ref[...] = jnp.zeros_like(v_ref)

    tc, tp, hw = x_ref.shape
    hwo = w_ref.shape[1]

    # One batched MXU matmul for the whole time block (M = Tc*TP, not HWo=16).
    # TP is always a multiple of 8, so merging (Tc, TP) is a free relayout.
    pooled = jnp.dot(
        x_ref[...].reshape(tc * tp, hw), w_ref[...],
        preferred_element_type=jnp.float32,
    ).reshape(tc, tp, hwo)

    # Unrolled LIF recurrence on small [TP, HWo] state.
    v = v_ref[...]
    for t in range(n_t):
        v = v * decay + pooled[t]              # decay_input=False, v_reset=0
        fired = v >= v_th                      # heaviside forward
        out_ref[t] = fired.astype(out_ref.dtype)
        v = jnp.where(fired, 0.0, v)           # hard reset to 0
    v_ref[...] = v


def _vmem_capacity_bytes():
    try:
        return int(pltpu.get_tpu_info().vmem_capacity_bytes)
    except Exception:
        return 64 << 20  # conservative (v7x per-TensorCore VMEM)


def _block_need_bytes(Tc, TP, HW, HWo, itemsize):
    """Total VMEM footprint: double-buffered x/out blocks + pool matrix + v scratch."""
    rup = lambda n, m: ((n + m - 1) // m) * m
    x_blk = Tc * rup(TP, 8) * rup(HW, 128) * itemsize
    o_blk = Tc * rup(TP, 8) * rup(HWo, 128) * itemsize
    w_blk = rup(HW, 8) * rup(HWo, 128) * 4
    v_blk = rup(TP, 8) * rup(HWo, 128) * 4
    return 2 * (x_blk + o_blk) + 2 * w_blk + v_blk


def _pick_tiles(T, P, HW, HWo, itemsize, budget_bytes):
    """P is already a multiple of 8.  Returns (Tc, TP)."""
    tp_cands = [d for d in range(8, P + 1, 8) if P % d == 0]
    fitting = [d for d in tp_cands
               if _block_need_bytes(1, d, HW, HWo, itemsize) <= budget_bytes]
    if not fitting:
        fitting = [min(tp_cands)]
    # Prefer >= 2 blocks along the parallel axis (feeds both v7x TensorCores);
    # rows stay fully contiguous regardless of TP, so this is ~free on 1-TC parts.
    multi = [d for d in fitting if P // d >= 2]
    TP = max(multi) if multi else max(fitting)

    Tc = 1
    for cand in (8, 4, 2, 1):
        if T % cand == 0 and _block_need_bytes(cand, TP, HW, HWo, itemsize) <= budget_bytes:
            Tc = cand
            break
    return Tc, TP


def spiking_avg_pool2d(x, kernel_size=5, stride=3, padding=0,
                       tau=1.25, v_threshold=0.5):
    """x: [T, N, C, H, W] -> spikes [T, N, C, Ho, Wo]."""
    assert padding == 0, "padding=0 is the module default"
    T, N, C, H, W = x.shape
    Ho = (H - kernel_size) // stride + 1
    Wo = (W - kernel_size) // stride + 1
    P, HW, HWo = N * C, H * W, Ho * Wo

    # Natural layout: [T, P, HW]; pure reshape, no HBM transpose of x.
    xf = x.reshape(T, P, HW)
    P_pad = ((P + 7) // 8) * 8                 # sublane pad only
    if P_pad != P:
        xf = jnp.pad(xf, ((0, 0), (0, P_pad - P), (0, 0)))   # zero rows -> no spikes

    itemsize = jnp.dtype(x.dtype).itemsize
    cap = _vmem_capacity_bytes()
    budget = int(min(max(cap // 2, 16 << 20), 32 << 20))
    Tc, TP = _pick_tiles(T, P_pad, HW, HWo, itemsize, budget)

    w = jnp.asarray(_make_pool_matrix(H, W, kernel_size, stride))

    kernel = functools.partial(
        _spiking_avgpool_kernel,
        n_t=Tc,
        decay=float(1.0 - 1.0 / tau),
        v_th=float(v_threshold),
    )

    need = _block_need_bytes(Tc, TP, HW, HWo, itemsize)
    # Never clamp below the real requirement; leave headroom below physical VMEM.
    vmem_limit = int(max(need + (4 << 20), 16 << 20))
    vmem_limit = int(min(vmem_limit, max(cap - (16 << 20), need + (2 << 20))))

    out = pl.pallas_call(
        kernel,
        out_shape=jax.ShapeDtypeStruct((T, P_pad, HWo), x.dtype),
        grid_spec=pltpu.PrefetchScalarGridSpec(
            num_scalar_prefetch=0,
            grid=(P_pad // TP, T // Tc),          # P tiles parallel, time serial
            in_specs=[
                pl.BlockSpec((Tc, TP, HW), lambda p, tt: (tt, p, 0)),
                pl.BlockSpec((HW, HWo), lambda p, tt: (0, 0)),
            ],
            out_specs=pl.BlockSpec((Tc, TP, HWo), lambda p, tt: (tt, p, 0)),
            scratch_shapes=[pltpu.VMEM((TP, HWo), jnp.float32)],
        ),
        compiler_params=pltpu.CompilerParams(
            dimension_semantics=("parallel", "arbitrary"),
            vmem_limit_bytes=vmem_limit,
        ),
    )(xf, w)

    if P_pad != P:
        out = out[:, :P, :]
    return out.reshape(T, N, C, Ho, Wo)


def _reference(x, kernel_size=5, stride=3, tau=1.25, v_threshold=0.5):
    """Plain-JAX reference (avg-pool + multi-step LIF)."""
    T, N, C, H, W = x.shape
    Ho = (H - kernel_size) // stride + 1
    Wo = (W - kernel_size) // stride + 1
    pooled = jnp.zeros((T, N, C, Ho, Wo), jnp.float32)
    for kh in range(kernel_size):
        for kw in range(kernel_size):
            pooled = pooled + x[:, :, :,
                                kh:kh + stride * (Ho - 1) + 1:stride,
                                kw:kw + stride * (Wo - 1) + 1:stride].astype(jnp.float32)
    pooled = pooled / (kernel_size * kernel_size)
    v = jnp.zeros((N, C, Ho, Wo), jnp.float32)
    decay = 1.0 - 1.0 / tau
    outs = []
    for t in range(T):
        v = v * decay + pooled[t]
        s = (v - v_threshold >= 0.0).astype(x.dtype)
        outs.append(s)
        v = v * (1.0 - s.astype(jnp.float32))
    return jnp.stack(outs, axis=0)


if __name__ == "__main__":
    T, N, C, H, W = 8, 2, 4, 16, 16
    key = jax.random.PRNGKey(0)
    # Scale so membrane potentials straddle the 0.5 threshold meaningfully.
    x = jax.random.normal(key, (T, N, C, H, W), dtype=jnp.float32) * 2.0

    out = spiking_avg_pool2d(x)
    out = jax.block_until_ready(out)

    ref = _reference(x)
    assert out.shape == ref.shape == (T, N, C, 4, 4)

    # The kernel sums pool windows on the MXU (default TPU matmul precision),
    # the reference uses sequential f32 VPU adds; rounding near the 0.5
    # threshold can flip a rare spike (which cascades for that neuron), so
    # compare with a tolerance on the mismatch fraction, not bit-exactness.
    mismatch = float(np.mean(np.asarray(out) != np.asarray(ref)))
    assert mismatch <= 0.02, f"spike mismatch fraction too high: {mismatch}"

    print("KERNEL_OK")
</pallas_src>

<mosaic_0001>
module attributes {stable_mosaic.version = 11 : i64} {
  func.func @_spiking_avgpool_kernel(%arg0: i32, %arg1: i32, %arg2: memref<8x8x256xf32, #tpu.memory_space<vmem>>, %arg3: memref<256x16xf32, #tpu.memory_space<vmem>>, %arg4: memref<8x8x16xf32, #tpu.memory_space<vmem>>, %arg5: memref<8x16xf32, #tpu.memory_space<vmem>>) attributes {dimension_semantics = [#tpu.dimension_semantics<parallel>, #tpu.dimension_semantics<arbitrary>], iteration_bounds = array<i64: 1, 1>, scalar_prefetch = 0 : i64, scratch_operands = 1 : i64, tpu.core_type = #tpu.core_type<tc>, window_params = [{transform_indices = @transform_0, window_bounds = array<i64: 8, 8, 256>}, {pipeline_mode = #tpu.pipeline_mode<synchronous>, transform_indices = @transform_1, window_bounds = array<i64: 256, 16>}, {transform_indices = @transform_2, window_bounds = array<i64: 8, 8, 16>}]} {
    %c0_i32 = arith.constant 0 : i32
    %0 = arith.cmpi eq, %arg1, %c0_i32 : i32
    %1 = arith.extui %0 : i1 to i32
    %c0_i32_0 = arith.constant 0 : i32
    %2 = arith.cmpi ne, %1, %c0_i32_0 : i32
    scf.if %2 {
      %cst_50 = arith.constant 0.000000e+00 : f32
      %122 = vector.broadcast %cst_50 : f32 to vector<8x16xf32>
      %c0_51 = arith.constant 0 : index
      %c0_52 = arith.constant 0 : index
      %123 = vector.load %arg5[%c0_51, %c0_52] : memref<8x16xf32, #tpu.memory_space<vmem>>, vector<8x16xf32>
      tpu.vector_store %arg5[%c0_51, %c0_52], %122 {strides = array<i32>} : memref<8x16xf32, #tpu.memory_space<vmem>>, vector<8x16xf32>,
    } else {
    }
    %c0 = arith.constant 0 : index
    %c0_1 = arith.constant 0 : index
    %c0_2 = arith.constant 0 : index
    %3 = vector.load %arg2[%c0, %c0_1, %c0_2] : memref<8x8x256xf32, #tpu.memory_space<vmem>>, vector<8x8x256xf32>
    %4 = vector.shape_cast %3 : vector<8x8x256xf32> to vector<64x256xf32>
    %c0_3 = arith.constant 0 : index
    %c0_4 = arith.constant 0 : index
    %5 = vector.load %arg3[%c0_3, %c0_4] : memref<256x16xf32, #tpu.memory_space<vmem>>, vector<256x16xf32>
    %cst = arith.constant dense<0.000000e+00> : vector<64x16xf32>
    %6 = tpu.matmul %4, %5, %cst {dimension_numbers = #tpu.dot_dimension_numbers<[1], [0], [0], [1], [0, 0, 1, 1], [], []>} : vector<64x256xf32>, vector<256x16xf32>, vector<64x16xf32> -> vector<64x16xf32>
    %7 = vector.shape_cast %6 : vector<64x16xf32> to vector<8x8x16xf32>
    %c0_5 = arith.constant 0 : index
    %c0_6 = arith.constant 0 : index
    %8 = vector.load %arg5[%c0_5, %c0_6] : memref<8x16xf32, #tpu.memory_space<vmem>>, vector<8x16xf32>
    %cst_7 = arith.constant 2.000000e-01 : f32
    %9 = vector.broadcast %cst_7 : f32 to vector<8x16xf32>
    %10 = arith.mulf %8, %9 : vector<8x16xf32>
    %11 = vector.extract_strided_slice %7 {offsets = [0, 0, 0], sizes = [1, 8, 16], strides = [1, 1, 1]} : vector<8x8x16xf32> to vector<1x8x16xf32>
    %12 = vector.shape_cast %11 : vector<1x8x16xf32> to vector<8x16xf32>
    %13 = arith.addf %10, %12 : vector<8x16xf32>
    %cst_8 = arith.constant 5.000000e-01 : f32
    %14 = vector.broadcast %cst_8 : f32 to vector<8x16xf32>
    %15 = arith.cmpf oge, %13, %14 : vector<8x16xf32>
    %16 = arith.extui %15 : vector<8x16xi1> to vector<8x16xi32>
    %17 = arith.sitofp %16 : vector<8x16xi32> to vector<8x16xf32>
    %c0_9 = arith.constant 0 : index
    %c0_10 = arith.constant 0 : index
    %c0_11 = arith.constant 0 : index
    %18 = vector.load %arg4[%c0_9, %c0_10, %c0_11] : memref<8x8x16xf32, #tpu.memory_space<vmem>>, vector<1x8x16xf32>
    %19 = vector.shape_cast %18 : vector<1x8x16xf32> to vector<8x16xf32>
    %20 = vector.shape_cast %17 : vector<8x16xf32> to vector<1x8x16xf32>
    tpu.vector_store %arg4[%c0_9, %c0_10, %c0_11], %20 {strides = array<i32>} : memref<8x8x16xf32, #tpu.memory_space<vmem>>, vector<1x8x16xf32>,
    %cst_12 = arith.constant 0.000000e+00 : f32
    %21 = vector.broadcast %cst_12 : f32 to vector<8x16xf32>
    %22 = arith.select %15, %21, %13 : vector<8x16xi1>, vector<8x16xf32>
    %cst_13 = arith.constant 2.000000e-01 : f32
    %23 = vector.broadcast %cst_13 : f32 to vector<8x16xf32>
    %24 = arith.mulf %22, %23 : vector<8x16xf32>
    %25 = vector.extract_strided_slice %7 {offsets = [1, 0, 0], sizes = [1, 8, 16], strides = [1, 1, 1]} : vector<8x8x16xf32> to vector<1x8x16xf32>
    %26 = vector.shape_cast %25 : vector<1x8x16xf32> to vector<8x16xf32>
    %27 = arith.addf %24, %26 : vector<8x16xf32>
    %cst_14 = arith.constant 5.000000e-01 : f32
    %28 = vector.broadcast %cst_14 : f32 to vector<8x16xf32>
    %29 = arith.cmpf oge, %27, %28 : vector<8x16xf32>
    %30 = arith.extui %29 : vector<8x16xi1> to vector<8x16xi32>
    %31 = arith.sitofp %30 : vector<8x16xi32> to vector<8x16xf32>
    %c1 = arith.constant 1 : index
    %c0_15 = arith.constant 0 : index
    %c0_16 = arith.constant 0 : index
    %32 = vector.load %arg4[%c1, %c0_15, %c0_16] : memref<8x8x16xf32, #tpu.memory_space<vmem>>, vector<1x8x16xf32>
    %33 = vector.shape_cast %32 : vector<1x8x16xf32> to vector<8x16xf32>
    %34 = vector.shape_cast %31 : vector<8x16xf32> to vector<1x8x16xf32>
    tpu.vector_store %arg4[%c1, %c0_15, %c0_16], %34 {strides = array<i32>} : memref<8x8x16xf32, #tpu.memory_space<vmem>>, vector<1x8x16xf32>,
    %cst_17 = arith.constant 0.000000e+00 : f32
    %35 = vector.broadcast %cst_17 : f32 to vector<8x16xf32>
    %36 = arith.select %29, %35, %27 : vector<8x16xi1>, vector<8x16xf32>
    %cst_18 = arith.constant 2.000000e-01 : f32
    %37 = vector.broadcast %cst_18 : f32 to vector<8x16xf32>
    %38 = arith.mulf %36, %37 : vector<8x16xf32>
    %39 = vector.extract_strided_slice %7 {offsets = [2, 0, 0], sizes = [1, 8, 16], strides = [1, 1, 1]} : vector<8x8x16xf32> to vector<1x8x16xf32>
    %40 = vector.shape_cast %39 : vector<1x8x16xf32> to vector<8x16xf32>
    %41 = arith.addf %38, %40 : vector<8x16xf32>
    %cst_19 = arith.constant 5.000000e-01 : f32
    %42 = vector.broadcast %cst_19 : f32 to vector<8x16xf32>
    %43 = arith.cmpf oge, %41, %42 : vector<8x16xf32>
    %44 = arith.extui %43 : vector<8x16xi1> to vector<8x16xi32>
    %45 = arith.sitofp %44 : vector<8x16xi32> to vector<8x16xf32>
    %c2 = arith.constant 2 : index
    %c0_20 = arith.constant 0 : index
    %c0_21 = arith.constant 0 : index
    %46 = vector.load %arg4[%c2, %c0_20, %c0_21] : memref<8x8x16xf32, #tpu.memory_space<vmem>>, vector<1x8x16xf32>
    %47 = vector.shape_cast %46 : vector<1x8x16xf32> to vector<8x16xf32>
    %48 = vector.shape_cast %45 : vector<8x16xf32> to vector<1x8x16xf32>
    tpu.vector_store %arg4[%c2, %c0_20, %c0_21], %48 {strides = array<i32>} : memref<8x8x16xf32, #tpu.memory_space<vmem>>, vector<1x8x16xf32>,
    %cst_22 = arith.constant 0.000000e+00 : f32
    %49 = vector.broadcast %cst_22 : f32 to vector<8x16xf32>
    %50 = arith.select %43, %49, %41 : vector<8x16xi1>, vector<8x16xf32>
    %cst_23 = arith.constant 2.000000e-01 : f32
    %51 = vector.broadcast %cst_23 : f32 to vector<8x16xf32>
    %52 = arith.mulf %50, %51 : vector<8x16xf32>
    %53 = vector.extract_strided_slice %7 {offsets = [3, 0, 0], sizes = [1, 8, 16], strides = [1, 1, 1]} : vector<8x8x16xf32> to vector<1x8x16xf32>
    %54 = vector.shape_cast %53 : vector<1x8x16xf32> to vector<8x16xf32>
    %55 = arith.addf %52, %54 : vector<8x16xf32>
    %cst_24 = arith.constant 5.000000e-01 : f32
    %56 = vector.broadcast %cst_24 : f32 to vector<8x16xf32>
    %57 = arith.cmpf oge, %55, %56 : vector<8x16xf32>
    %58 = arith.extui %57 : vector<8x16xi1> to vector<8x16xi32>
    %59 = arith.sitofp %58 : vector<8x16xi32> to vector<8x16xf32>
    %c3 = arith.constant 3 : index
    %c0_25 = arith.constant 0 : index
    %c0_26 = arith.constant 0 : index
    %60 = vector.load %arg4[%c3, %c0_25, %c0_26] : memref<8x8x16xf32, #tpu.memory_space<vmem>>, vector<1x8x16xf32>
    %61 = vector.shape_cast %60 : vector<1x8x16xf32> to vector<8x16xf32>
    %62 = vector.shape_cast %59 : vector<8x16xf32> to vector<1x8x16xf32>
    tpu.vector_store %arg4[%c3, %c0_25, %c0_26], %62 {strides = array<i32>} : memref<8x8x16xf32, #tpu.memory_space<vmem>>, vector<1x8x16xf32>,
    %cst_27 = arith.constant 0.000000e+00 : f32
    %63 = vector.broadcast %cst_27 : f32 to vector<8x16xf32>
    %64 = arith.select %57, %63, %55 : vector<8x16xi1>, vector<8x16xf32>
    %cst_28 = arith.constant 2.000000e-01 : f32
    %65 = vector.broadcast %cst_28 : f32 to vector<8x16xf32>
    %66 = arith.mulf %64, %65 : vector<8x16xf32>
    %67 = vector.extract_strided_slice %7 {offsets = [4, 0, 0], sizes = [1, 8, 16], strides = [1, 1, 1]} : vector<8x8x16xf32> to vector<1x8x16xf32>
    %68 = vector.shape_cast %67 : vector<1x8x16xf32> to vector<8x16xf32>
    %69 = arith.addf %66, %68 : vector<8x16xf32>
    %cst_29 = arith.constant 5.000000e-01 : f32
    %70 = vector.broadcast %cst_29 : f32 to vector<8x16xf32>
    %71 = arith.cmpf oge, %69, %70 : vector<8x16xf32>
    %72 = arith.extui %71 : vector<8x16xi1> to vector<8x16xi32>
    %73 = arith.sitofp %72 : vector<8x16xi32> to vector<8x16xf32>
    %c4 = arith.constant 4 : index
    %c0_30 = arith.constant 0 : index
    %c0_31 = arith.constant 0 : index
    %74 = vector.load %arg4[%c4, %c0_30, %c0_31] : memref<8x8x16xf32, #tpu.memory_space<vmem>>, vector<1x8x16xf32>
    %75 = vector.shape_cast %74 : vector<1x8x16xf32> to vector<8x16xf32>
    %76 = vector.shape_cast %73 : vector<8x16xf32> to vector<1x8x16xf32>
    tpu.vector_store %arg4[%c4, %c0_30, %c0_31], %76 {strides = array<i32>} : memref<8x8x16xf32, #tpu.memory_space<vmem>>, vector<1x8x16xf32>,
    %cst_32 = arith.constant 0.000000e+00 : f32
    %77 = vector.broadcast %cst_32 : f32 to vector<8x16xf32>
    %78 = arith.select %71, %77, %69 : vector<8x16xi1>, vector<8x16xf32>
    %cst_33 = arith.constant 2.000000e-01 : f32
    %79 = vector.broadcast %cst_33 : f32 to vector<8x16xf32>
    %80 = arith.mulf %78, %79 : vector<8x16xf32>
    %81 = vector.extract_strided_slice %7 {offsets = [5, 0, 0], sizes = [1, 8, 16], strides = [1, 1, 1]} : vector<8x8x16xf32> to vector<1x8x16xf32>
    %82 = vector.shape_cast %81 : vector<1x8x16xf32> to vector<8x16xf32>
    %83 = arith.addf %80, %82 : vector<8x16xf32>
    %cst_34 = arith.constant 5.000000e-01 : f32
    %84 = vector.broadcast %cst_34 : f32 to vector<8x16xf32>
    %85 = arith.cmpf oge, %83, %84 : vector<8x16xf32>
    %86 = arith.extui %85 : vector<8x16xi1> to vector<8x16xi32>
    %87 = arith.sitofp %86 : vector<8x16xi32> to vector<8x16xf32>
    %c5 = arith.constant 5 : index
    %c0_35 = arith.constant 0 : index
    %c0_36 = arith.constant 0 : index
    %88 = vector.load %arg4[%c5, %c0_35, %c0_36] : memref<8x8x16xf32, #tpu.memory_space<vmem>>, vector<1x8x16xf32>
    %89 = vector.shape_cast %88 : vector<1x8x16xf32> to vector<8x16xf32>
    %90 = vector.shape_cast %87 : vector<8x16xf32> to vector<1x8x16xf32>
    tpu.vector_store %arg4[%c5, %c0_35, %c0_36], %90 {strides = array<i32>} : memref<8x8x16xf32, #tpu.memory_space<vmem>>, vector<1x8x16xf32>,
    %cst_37 = arith.constant 0.000000e+00 : f32
    %91 = vector.broadcast %cst_37 : f32 to vector<8x16xf32>
    %92 = arith.select %85, %91, %83 : vector<8x16xi1>, vector<8x16xf32>
    %cst_38 = arith.constant 2.000000e-01 : f32
    %93 = vector.broadcast %cst_38 : f32 to vector<8x16xf32>
    %94 = arith.mulf %92, %93 : vector<8x16xf32>
    %95 = vector.extract_strided_slice %7 {offsets = [6, 0, 0], sizes = [1, 8, 16], strides = [1, 1, 1]} : vector<8x8x16xf32> to vector<1x8x16xf32>
    %96 = vector.shape_cast %95 : vector<1x8x16xf32> to vector<8x16xf32>
    %97 = arith.addf %94, %96 : vector<8x16xf32>
    %cst_39 = arith.constant 5.000000e-01 : f32
    %98 = vector.broadcast %cst_39 : f32 to vector<8x16xf32>
    %99 = arith.cmpf oge, %97, %98 : vector<8x16xf32>
    %100 = arith.extui %99 : vector<8x16xi1> to vector<8x16xi32>
    %101 = arith.sitofp %100 : vector<8x16xi32> to vector<8x16xf32>
    %c6 = arith.constant 6 : index
    %c0_40 = arith.constant 0 : index
    %c0_41 = arith.constant 0 : index
    %102 = vector.load %arg4[%c6, %c0_40, %c0_41] : memref<8x8x16xf32, #tpu.memory_space<vmem>>, vector<1x8x16xf32>
    %103 = vector.shape_cast %102 : vector<1x8x16xf32> to vector<8x16xf32>
    %104 = vector.shape_cast %101 : vector<8x16xf32> to vector<1x8x16xf32>
    tpu.vector_store %arg4[%c6, %c0_40, %c0_41], %104 {strides = array<i32>} : memref<8x8x16xf32, #tpu.memory_space<vmem>>, vector<1x8x16xf32>,
    %cst_42 = arith.constant 0.000000e+00 : f32
    %105 = vector.broadcast %cst_42 : f32 to vector<8x16xf32>
    %106 = arith.select %99, %105, %97 : vector<8x16xi1>, vector<8x16xf32>
    %cst_43 = arith.constant 2.000000e-01 : f32
    %107 = vector.broadcast %cst_43 : f32 to vector<8x16xf32>
    %108 = arith.mulf %106, %107 : vector<8x16xf32>
    %109 = vector.extract_strided_slice %7 {offsets = [7, 0, 0], sizes = [1, 8, 16], strides = [1, 1, 1]} : vector<8x8x16xf32> to vector<1x8x16xf32>
    %110 = vector.shape_cast %109 : vector<1x8x16xf32> to vector<8x16xf32>
    %111 = arith.addf %108, %110 : vector<8x16xf32>
    %cst_44 = arith.constant 5.000000e-01 : f32
    %112 = vector.broadcast %cst_44 : f32 to vector<8x16xf32>
    %113 = arith.cmpf oge, %111, %112 : vector<8x16xf32>
    %114 = arith.extui %113 : vector<8x16xi1> to vector<8x16xi32>
    %115 = arith.sitofp %114 : vector<8x16xi32> to vector<8x16xf32>
    %c7 = arith.constant 7 : index
    %c0_45 = arith.constant 0 : index
    %c0_46 = arith.constant 0 : index
    %116 = vector.load %arg4[%c7, %c0_45, %c0_46] : memref<8x8x16xf32, #tpu.memory_space<vmem>>, vector<1x8x16xf32>
    %117 = vector.shape_cast %116 : vector<1x8x16xf32> to vector<8x16xf32>
    %118 = vector.shape_cast %115 : vector<8x16xf32> to vector<1x8x16xf32>
    tpu.vector_store %arg4[%c7, %c0_45, %c0_46], %118 {strides = array<i32>} : memref<8x8x16xf32, #tpu.memory_space<vmem>>, vector<1x8x16xf32>,
    %cst_47 = arith.constant 0.000000e+00 : f32
    %119 = vector.broadcast %cst_47 : f32 to vector<8x16xf32>
    %120 = arith.select %113, %119, %111 : vector<8x16xi1>, vector<8x16xf32>
    %c0_48 = arith.constant 0 : index
    %c0_49 = arith.constant 0 : index
    %121 = vector.load %arg5[%c0_48, %c0_49] : memref<8x16xf32, #tpu.memory_space<vmem>>, vector<8x16xf32>
    tpu.vector_store %arg5[%c0_48, %c0_49], %120 {strides = array<i32>} : memref<8x16xf32, #tpu.memory_space<vmem>>, vector<8x16xf32>,
    return
  }
  func.func @transform_0(%arg0: i32, %arg1: i32) -> (i32, i32, i32) {
    %c0_i32 = arith.constant 0 : i32
    %c0_i32_0 = arith.constant 0 : i32
    return %arg1, %arg0, %c0_i32 : i32, i32, i32
  }
  func.func @transform_1(%arg0: i32, %arg1: i32) -> (i32, i32) {
    %c0_i32 = arith.constant 0 : i32
    %c0_i32_0 = arith.constant 0 : i32
    %c0_i32_1 = arith.constant 0 : i32
    return %c0_i32, %c0_i32_0 : i32, i32
  }
  func.func @transform_2(%arg0: i32, %arg1: i32) -> (i32, i32, i32) {
    %c0_i32 = arith.constant 0 : i32
    %c0_i32_0 = arith.constant 0 : i32
    return %arg1, %arg0, %c0_i32 : i32, i32, i32
  }
}

</mosaic_0001>

<bundles_post_ra>
// kernel: tpu_custom_call.1
= control target key start
LH: loop header
LB: loop body
LE: loop exit
PB: predicated region body
PF: predicated region fallthrough
CT: control target
= control target key end

     0   :  { %s560_s0 = inlined_call_operand.vmem [shape: f32[8,8,256], index: 0, kind: input, shape index: {}]   ;;  %s561_s1 = inlined_call_operand.vmem [shape: f32[256,16], index: 1, kind: input, shape index: {}]   ;;  %s562_s2 = inlined_call_operand.hbm [shape: f32[8,8,16], index: 2, kind: output, shape index: {}]  }
   0x1   :  { %v65_v0 = vld [vmem:[%s561_s1 + $0xf8] sm:$0xff]  ;;  %v64_v2 = vld [vmem:[%s561_s1 + $0xf0] sm:$0xff]  ;;  %v63_v4 = vld [vmem:[%s561_s1 + $0xe8] sm:$0xff] }
   0x2   :  { %v49_v1 = vld [vmem:[%s561_s1 + $0x78] sm:$0xff]  ;;  %261 = vmatprep.subr.mxu0 %v65_v0  ;;  %v48_v3 = vld [vmem:[%s561_s1 + $0x70] sm:$0xff]  ;;  %317 = vmatprep.subr.mxu1 %v65_v0  ;;  %v47_v5 = vld [vmem:[%s561_s1 + $0x68] sm:$0xff] }
   0x3   :  { %262 = vmatpush3.msra.mxu0 %v49_v1  ;;  %333 = vmatpush3.msra.mxu1 %v49_v1  ;;  %v62_v6 = vld [vmem:[%s561_s1 + $0xe0] sm:$0xff]  ;;  %v61_v8 = vld [vmem:[%s561_s1 + $0xd8] sm:$0xff]  ;;  %v60_v10 = vld [vmem:[%s561_s1 + $0xd0] sm:$0xff] }
   0x4   :  { %263 = vmatprep.subr.mxu0 %v64_v2  ;;  %318 = vmatprep.subr.mxu1 %v64_v2  ;;  %v46_v7 = vld [vmem:[%s561_s1 + $0x60] sm:$0xff]  ;;  %v45_v9 = vld [vmem:[%s561_s1 + $0x58] sm:$0xff]  ;;  %v44_v11 = vld [vmem:[%s561_s1 + $0x50] sm:$0xff] }
   0x5   :  { %264 = vmatpush3.msra.mxu0 %v48_v3  ;;  %334 = vmatpush3.msra.mxu1 %v48_v3  ;;  %v59_v12 = vld [vmem:[%s561_s1 + $0xc8] sm:$0xff]  ;;  %v58_v15 = vld [vmem:[%s561_s1 + $0xc0] sm:$0xff]  ;;  %v57_v17 = vld [vmem:[%s561_s1 + $0xb8] sm:$0xff] }
   0x6   :  { %265 = vmatprep.subr.mxu0 %v63_v4  ;;  %319 = vmatprep.subr.mxu1 %v63_v4  ;;  %v19_v13 = vld [vmem:[%s560_s0 + $0x8] sm:$0xff]  ;;  %v42_v16 = vld [vmem:[%s561_s1 + $0x40] sm:$0xff]  ;;  %v41_v18 = vld [vmem:[%s561_s1 + $0x38] sm:$0xff] }
   0x7   :  { %266 = vmatpush3.msra.mxu0 %v47_v5  ;;  %335 = vmatpush3.msra.mxu1 %v47_v5  ;;  %v43_v14 = vld [vmem:[%s561_s1 + $0x48] sm:$0xff]  ;;  %v56_v19 = vld [vmem:[%s561_s1 + $0xb0] sm:$0xff] }
   0x8   :  { %267 = vmatprep.subr.mxu0 %v62_v6  ;;  %320 = vmatprep.subr.mxu1 %v62_v6 }
   0x9   :  { %268 = vmatpush3.msra.mxu0 %v46_v7  ;;  %336 = vmatpush3.msra.mxu1 %v46_v7 }
   0xa   :  { %269 = vmatprep.subr.mxu0 %v61_v8  ;;  %321 = vmatprep.subr.mxu1 %v61_v8 }
   0xb   :  { %270 = vmatpush3.msra.mxu0 %v45_v9  ;;  %337 = vmatpush3.msra.mxu1 %v45_v9 }
   0xc   :  { %271 = vmatprep.subr.mxu0 %v60_v10  ;;  %130 = vmatprep.mubr.f32.mxu0 %v19_v13 }
   0xd   :  { %272 = vmatpush3.msra.mxu0 %v44_v11  ;;  %322 = vmatprep.subr.mxu1 %v60_v10 }
   0xe   :  { %273 = vmatprep.subr.mxu0 %v59_v12  ;;  %338 = vmatpush3.msra.mxu1 %v44_v11 }
   0xf   :  { %274 = vmatpush3.msra.mxu0 %v43_v14  ;;  %323 = vmatprep.subr.mxu1 %v59_v12 }
  0x10   :  { %275 = vmatprep.subr.mxu0 %v58_v15  ;;  %339 = vmatpush3.msra.mxu1 %v43_v14 }
  0x11   :  { %276 = vmatpush3.msra.mxu0 %v42_v16  ;;  %324 = vmatprep.subr.mxu1 %v58_v15 }
  0x12   :  { %7 = vsyncpa [#allocation4], 0  ;;  %277 = vmatprep.subr.mxu0 %v57_v17  ;;  %v40_v20 = vld [vmem:[%s561_s1 + $0x30] sm:$0xff]  ;;  %340 = vmatpush3.msra.mxu1 %v42_v16  ;;  %v55_v21 = vld [vmem:[%s561_s1 + $0xa8] sm:$0xff]  ;;  %vm16_vm0 = vcmask 130048   ;;  %v375_v48 = vmov 0.0  }
  0x13   :  { %278 = vmatpush3.msra.mxu0 %v41_v18  ;;  %325 = vmatprep.subr.mxu1 %v57_v17  ;;  %v39_v22 = vld [vmem:[%s561_s1 + $0x28] sm:$0xff]  ;;  %v54_v23 = vld [vmem:[%s561_s1 + $0xa0] sm:$0xff]  ;;  %v53_v25 = vld [vmem:[%s561_s1 + $0x98] sm:$0xff]  ;;  %17 = vst.msk [vmem:[#allocation2] sm:$0xff] %vm16_vm0, %v375_v48 }
  0x14   :  { %279 = vmatprep.subr.mxu0 %v56_v19  ;;  %341 = vmatpush3.msra.mxu1 %v41_v18  ;;  %v38_v24 = vld [vmem:[%s561_s1 + $0x20] sm:$0xff]  ;;  %v37_v26 = vld [vmem:[%s561_s1 + $0x18] sm:$0xff]  ;;  %v52_v27 = vld [vmem:[%s561_s1 + $0x90] sm:$0xff] }
  0x15   :  { %280 = vmatpush3.msra.mxu0 %v40_v20  ;;  %326 = vmatprep.subr.mxu1 %v56_v19  ;;  %v36_v28 = vld [vmem:[%s561_s1 + $0x10] sm:$0xff]  ;;  %v51_v29 = vld [vmem:[%s561_s1 + $0x88] sm:$0xff]  ;;  %v50_v31 = vld [vmem:[%s561_s1 + $0x80] sm:$0xff] }
  0x16   :  { %281 = vmatprep.subr.mxu0 %v55_v21  ;;  %342 = vmatpush3.msra.mxu1 %v40_v20  ;;  %v35_v30 = vld [vmem:[%s561_s1 + $0x8] sm:$0xff]  ;;  %v34_v32 = vld [vmem:[%s561_s1] sm:$0xff]  ;;  %v21_v34 = vld [vmem:[%s560_s0 + $0x18] sm:$0xff] }
  0x17   :  { %282 = vmatpush3.msra.mxu0 %v39_v22  ;;  %327 = vmatprep.subr.mxu1 %v55_v21  ;;  %v18_v33 = vld [vmem:[%s560_s0] sm:$0xff]  ;;  %v27_v35 = vld [vmem:[%s560_s0 + $0x48] sm:$0xff]  ;;  %v29_v37 = vld [vmem:[%s560_s0 + $0x58] sm:$0xff] }
  0x18   :  { %283 = vmatprep.subr.mxu0 %v54_v23  ;;  %343 = vmatpush3.msra.mxu1 %v39_v22  ;;  %v26_v36 = vld [vmem:[%s560_s0 + $0x40] sm:$0xff]  ;;  %v20_v38 = vld [vmem:[%s560_s0 + $0x10] sm:$0xff]  ;;  %v23_v39 = vld [vmem:[%s560_s0 + $0x28] sm:$0xff] }
  0x19   :  { %284 = vmatpush3.msra.mxu0 %v38_v24  ;;  %328 = vmatprep.subr.mxu1 %v54_v23  ;;  %v28_v40 = vld [vmem:[%s560_s0 + $0x50] sm:$0xff]  ;;  %v31_v41 = vld [vmem:[%s560_s0 + $0x68] sm:$0xff]  ;;  %v22_v42 = vld [vmem:[%s560_s0 + $0x20] sm:$0xff] }
  0x1a   :  { %285 = vmatprep.subr.mxu0 %v53_v25  ;;  %344 = vmatpush3.msra.mxu1 %v38_v24  ;;  %v25_v43 = vld [vmem:[%s560_s0 + $0x38] sm:$0xff]  ;;  %v30_v44 = vld [vmem:[%s560_s0 + $0x60] sm:$0xff]  ;;  %v24_v46 = vld [vmem:[%s560_s0 + $0x30] sm:$0xff] }
  0x1b   :  { %286 = vmatpush3.msra.mxu0 %v37_v26  ;;  %329 = vmatprep.subr.mxu1 %v53_v25  ;;  %v33_v45 = vld [vmem:[%s560_s0 + $0x78] sm:$0xff]  ;;  %v32_v47 = vld [vmem:[%s560_s0 + $0x70] sm:$0xff]  ;;  %v171_v49 = vld [vmem:[#allocation2] sm:$0xff]  ;;  %s376_s0 = smov [#allocation3]  }
  0x1c   :  { %287 = vmatprep.subr.mxu0 %v52_v27  ;;  %345 = vmatpush3.msra.mxu1 %v37_v26  ;;  %v172_v51 = vmul.f32 0.2, %v171_v49  ;;  %s242_s20 = sshll.u32 %s376_s0, 4  ;;  %s243_s20 = int_to_ptr.vmem [resolvable:$true] %s242_s20 }
  0x1d   :  { %288 = vmatpush3.msra.mxu0 %v36_v28  ;;  %330 = vmatprep.subr.mxu1 %v52_v27  ;;  %s353_s21 = scalar_lea.vmem %s243_s20, 1024  ;;  %p358_p1 = scmp.lt.s32.totalorder %s243_s20, %s243_s20 }
  0x1e   :  { %289 = vmatprep.subr.mxu0 %v51_v29  ;;  %346 = vmatpush3.msra.mxu1 %v36_v28  ;;  %p354_p0 = scmp.ne.s32.totalorder %s243_s20, %s353_s21  ;;  %p359_p2 = scmp.lt.s32.totalorder %s353_s21, %s353_s21 }
  0x1f   :  { %290 = vmatpush3.msra.mxu0 %v35_v30  ;;  %331 = vmatprep.subr.mxu1 %v51_v29 }
  0x20   :  { %291 = vmatprep.subr.mxu0 %v50_v31  ;;  %347 = vmatpush3.msra.mxu1 %v35_v30  ;;  %p360_p3 = por %p359_p2, %p358_p1 }
  0x21   :  { %292 = vmatpush3.msra.mxu0 %v34_v32  ;;  %332 = vmatprep.subr.mxu1 %v50_v31 }
  0x22   :  { %131 = vmatmul.mubr.f32.vlgmr.msra.gmra.mxu0 %v18_v33  ;;  %348 = vmatpush3.msra.mxu1 %v34_v32  ;;  %p361_p4 = pnand %p360_p3, %p354_p0 }
  0x23   :  { %135 = vmatprep.mubr.f32.mxu0 %v21_v34  ;;  %150 = vmatprep.mubr.f32.mxu1 %v27_v35 }
  0x24   :  { %151 = vmatmul.mubr.f32.vlgmr.msra.gmra.mxu1 %v26_v36 }
  0x25   :  { %155 = vmatprep.mubr.f32.mxu1 %v29_v37 }
  0x26   :  { %136 = vmatmul.mubr.f32.gmra.mxu0 %v20_v38 }
  0x27   :  { %140 = vmatprep.mubr.f32.mxu0 %v23_v39 }
  0x28   :  { %156 = vmatmul.mubr.f32.gmra.mxu1 %v28_v40 }
  0x29   :  { %160 = vmatprep.mubr.f32.mxu1 %v31_v41 }
  0x2a   :  { %141 = vmatmul.mubr.f32.gmra.mxu0 %v22_v42 }
  0x2b   :  { %145 = vmatprep.mubr.f32.mxu0 %v25_v43 }
  0x2c   :  { %161 = vmatmul.mubr.f32.gmra.mxu1 %v30_v44 }
  0x2d   :  { %165 = vmatprep.mubr.f32.mxu1 %v33_v45 }
  0x2e   :  { %146 = vmatmul.mubr.f32.gmra.mxu0 %v24_v46 }
  0x30   :  { %166 = vmatmul.mubr.f32.gmra.mxu1 %v32_v47 }
  0xe2   :  { %v293_v50 = vpop.f32.mrf.mxu0 }
  0xe4   :  { %v294_v52 = vpop.f32.mrf.mxu0  ;;  %v305_v9 = vpop.f32.mrf.mxu1 }
  0xe5   :  { %v295_v53 = vadd.f32 %v294_v52, %v293_v50 }
  0xe6   :  { %v296_v54 = vpop.f32.mrf.mxu0  ;;  %v306_v13 = vpop.f32.mrf.mxu1 }
  0xe7   :  { %v173_v55 = vadd.f32 %v295_v53, %v172_v51  ;;  %v307_v17 = vadd.f32 %v306_v13, %v305_v9 }
  0xe8   :  { %v297_v56 = vpop.f32.mrf.mxu0  ;;  %v308_v16 = vpop.f32.mrf.mxu1 }
  0xe9   :  { %vm174_vm1 = vcmp.ge.f32.partialorder %v173_v55, 0.5  ;;  %v298_v60 = vadd.f32 %v297_v56, %v296_v54 }
  0xea   :  { %v253_v57 = vsel %vm174_vm1, 1.0, %v375_v48  ;;  %v179_v58 = vsel %vm174_vm1, 0.0, %v173_v55  ;;  %v299_v59 = vpop.f32.mrf.mxu0  ;;  %v309_v20 = vpop.f32.mrf.mxu1 }
  0xeb   :  { %178 = vst.msk [vmem:[#allocation3] sm:$0xff] %vm16_vm0, %v253_v57  ;;  %v180_v61 = vmul.f32 0.2, %v179_v58  ;;  %v310_v24 = vadd.f32 %v309_v20, %v308_v16 }
  0xec   :  { %v300_v63 = vpop.f32.mrf.mxu0  ;;  %v311_v23 = vpop.f32.mrf.mxu1 }
  0xed   :  { %v181_v62 = vadd.f32 %v298_v60, %v180_v61  ;;  %v301_v3 = vadd.f32 %v300_v63, %v299_v59 }
  0xee   :  { %v302_v2 = vpop.f32.mrf.mxu0  ;;  %v312_v27 = vpop.f32.mrf.mxu1 }
  0xef   :  { %vm182_vm2 = vcmp.ge.f32.partialorder %v181_v62, 0.5  ;;  %v313_v31 = vadd.f32 %v312_v27, %v311_v23 }
  0xf0   :  { %v254_v0 = vsel %vm182_vm2, 1.0, %v375_v48  ;;  %v187_v1 = vsel %vm182_vm2, 0.0, %v181_v62  ;;  %v303_v6 = vpop.f32.mrf.mxu0  ;;  %v314_v30 = vpop.f32.mrf.mxu1 }
  0xf1   :  { %186 = vst.msk [vmem:[#allocation3 + $0x8] sm:$0xff] %vm16_vm0, %v254_v0  ;;  %v188_v4 = vmul.f32 0.2, %v187_v1  ;;  %v304_v10 = vadd.f32 %v303_v6, %v302_v2 }
  0xf2   :  { %v315_v34 = vpop.f32.mrf.mxu1 }
  0xf3   :  { %v189_v5 = vadd.f32 %v301_v3, %v188_v4  ;;  %v316_v37 = vadd.f32 %v315_v34, %v314_v30 }
  0xf5   :  { %vm190_vm3 = vcmp.ge.f32.partialorder %v189_v5, 0.5 }
  0xf6   :  { %v255_v7 = vsel %vm190_vm3, 1.0, %v375_v48  ;;  %v195_v8 = vsel %vm190_vm3, 0.0, %v189_v5 }
  0xf7   :  { %194 = vst.msk [vmem:[#allocation3 + $0x10] sm:$0xff] %vm16_vm0, %v255_v7  ;;  %v196_v11 = vmul.f32 0.2, %v195_v8 }
  0xf9   :  { %v197_v12 = vadd.f32 %v304_v10, %v196_v11 }
  0xfb   :  { %vm198_vm4 = vcmp.ge.f32.partialorder %v197_v12, 0.5 }
  0xfc   :  { %v256_v14 = vsel %vm198_vm4, 1.0, %v375_v48  ;;  %v203_v15 = vsel %vm198_vm4, 0.0, %v197_v12 }
  0xfd   :  { %202 = vst.msk [vmem:[#allocation3 + $0x18] sm:$0xff] %vm16_vm0, %v256_v14  ;;  %v204_v18 = vmul.f32 0.2, %v203_v15 }
  0xff   :  { %v205_v19 = vadd.f32 %v307_v17, %v204_v18 }
 0x101   :  { %vm206_vm5 = vcmp.ge.f32.partialorder %v205_v19, 0.5 }
 0x102   :  { %v257_v21 = vsel %vm206_vm5, 1.0, %v375_v48  ;;  %v211_v22 = vsel %vm206_vm5, 0.0, %v205_v19 }
 0x103   :  { %210 = vst.msk [vmem:[#allocation3 + $0x20] sm:$0xff] %vm16_vm0, %v257_v21  ;;  %v212_v25 = vmul.f32 0.2, %v211_v22 }
 0x105   :  { %v213_v26 = vadd.f32 %v310_v24, %v212_v25 }
 0x107   :  { %vm214_vm6 = vcmp.ge.f32.partialorder %v213_v26, 0.5 }
 0x108   :  { %v258_v28 = vsel %vm214_vm6, 1.0, %v375_v48  ;;  %v219_v29 = vsel %vm214_vm6, 0.0, %v213_v26 }
 0x109   :  { %218 = vst.msk [vmem:[#allocation3 + $0x28] sm:$0xff] %vm16_vm0, %v258_v28  ;;  %v220_v32 = vmul.f32 0.2, %v219_v29 }
 0x10b   :  { %v221_v33 = vadd.f32 %v313_v31, %v220_v32 }
 0x10d   :  { %vm222_vm7 = vcmp.ge.f32.partialorder %v221_v33, 0.5 }
 0x10e   :  { %v259_v35 = vsel %vm222_vm7, 1.0, %v375_v48  ;;  %v227_v36 = vsel %vm222_vm7, 0.0, %v221_v33 }
 0x10f   :  { %226 = vst.msk [vmem:[#allocation3 + $0x30] sm:$0xff] %vm16_vm0, %v259_v35  ;;  %v228_v38 = vmul.f32 0.2, %v227_v36 }
 0x111   :  { %v229_v39 = vadd.f32 %v316_v37, %v228_v38 }
 0x113   :  { %vm230_vm8 = vcmp.ge.f32.partialorder %v229_v39, 0.5 }
 0x114   :  { %v260_v40 = vsel %vm230_vm8, 1.0, %v375_v48  ;;  %v235_v41 = vsel %vm230_vm8, 0.0, %v229_v39 }
 0x115   :  { %234 = vst.msk [vmem:[#allocation3 + $0x38] sm:$0xff] %vm16_vm0, %v260_v40  ;;  %236 = vst.msk [vmem:[#allocation2] sm:$0xff] %vm16_vm0, %v235_v41 }
 0x116   :  { %364 = shalt.err (!%p361_p4)
}
 0x117   :  { %s377_s22 = smov 128   ;;  %s378_s23 = smov 8  }
 0x118   :  { %248 = dma.vmem_to_hbm [thread:$0]  %s243_s20, 1024, %s562_s2, [#allocation4], %s377_s22, %s377_s22, %s378_s23  }
 0x119   :  { %373 = dma.done.wait [#allocation4], 1024  }
 0x11a   :  { %374 = vsyncadd [#allocation4], 4294966272 }
 0x11b   :  { %252 = vsyncpa [#allocation4], 1 }

</bundles_post_ra>
